<compile_context>
chip_gen: v6e
topology: v6e:2x2x1
jax: 0.10.0
libtpu: 0.0.40
codegen_flags: <defaults>
</compile_context>

<pallas_src>
import functools

import jax
import jax.numpy as jnp
from jax.experimental import pallas as pl
from jax.experimental.pallas import tpu as pltpu


def _round_up(x, m):
    return (x + m - 1) // m * m


def _pad_last(a, target):
    c = a.shape[-1]
    if c == target:
        return a
    return jnp.pad(a, [(0, 0)] * (a.ndim - 1) + [(0, target - c)])


def _choose_t_tile(n, cp, pad, itemsize, kernel_size,
                   vmem_budget=24 * 1024 * 1024):
    """Pick a T tile that keeps the double-buffered working set under budget."""
    # VMEM-resident weights: (K*Cp,Cp) conv + 2x (Cp,Cp) pointwise + small biases.
    weight_bytes = (kernel_size + 2) * cp * cp * itemsize + 8 * cp * 4
    # Per grid step: x_cur + x_prev + out_x + out_skip tiles, double-buffered.
    per_row = 4 * 2 * cp * itemsize
    t = max(vmem_budget - weight_bytes, per_row * 8) // per_row
    t = int(t) // 8 * 8
    t = max(8, min(t, 1024))
    t = min(t, _round_up(n, 8))
    t = max(t, _round_up(pad, 8))   # halo must fit inside one previous tile
    return t


def _wavenet_resblock_kernel(
    x_cur_ref,     # (T_tile, Cp)   current time tile (channels-last)
    x_prev_ref,    # (T_tile, Cp)   previous time tile (halo source)
    gamma_ref,     # (1, Cp)        FiLM scale, f32
    beta_ref,      # (1, Cp)        FiLM shift, f32
    wconv_ref,     # (K*Cp, Cp)     dilated conv weight, im2col-flattened
    bconv_ref,     # (1, Cp)        f32
    wres_ref,      # (Cp, Cp)       1x1 res conv
    bres_ref,      # (1, Cp)        f32
    wskip_ref,     # (Cp, Cp)       1x1 skip conv
    bskip_ref,     # (1, Cp)        f32
    out_x_ref,     # (T_tile, Cp)
    out_skip_ref,  # (T_tile, Cp)
    *,
    dilation: int,
    kernel_size: int,
):
    t_idx = pl.program_id(1)
    t_tile = x_cur_ref.shape[0]
    pad = dilation * (kernel_size - 1)

    x_cur = x_cur_ref[...]                                 # compute dtype

    # ---- im2col window: K shifted views concatenated along channels so the
    # dilated causal conv becomes ONE matmul of contraction depth K*Cp.
    taps = []
    if pad > 0:
        # Causal history = last `pad` rows of the previous tile; zeroed on the
        # first tile (this IS the causal left padding, done in-kernel).
        keep = (t_idx > 0).astype(x_cur.dtype)
        hist = x_prev_ref[t_tile - pad:, :] * keep         # (pad, Cp)
        buf = jnp.concatenate([hist, x_cur], axis=0)       # (pad + T_tile, Cp)
        for k in range(kernel_size - 1):
            off = k * dilation
            taps.append(buf[off:off + t_tile, :])
    taps.append(x_cur)      # last tap (offset == pad) is exactly the current tile
    x_win = jnp.concatenate(taps, axis=1) if len(taps) > 1 else taps[0]

    conv = jnp.dot(x_win, wconv_ref[...],
                   preferred_element_type=jnp.float32) + bconv_ref[...]

    # ---- res branch: 1x1 conv on the (unpadded) current tile
    res = jnp.dot(x_cur, wres_ref[...],
                  preferred_element_type=jnp.float32) + bres_ref[...]

    # ---- FiLM + gated activation, all in f32 (v5e has no bf16 VPU/EUP path).
    h = conv * gamma_ref[...] + beta_ref[...]
    # NOTE: if EUP-bound, tanh(h)*sigmoid(h) can be derived from a single
    # exp(-h) plus pl.reciprocal; kept exact here for bit-faithful f32 checks.
    h = jnp.tanh(h) * jax.nn.sigmoid(h)
    h = h + res
    out_x_ref[...] = h.astype(out_x_ref.dtype)

    # ---- skip branch: 1x1 conv on the post-residual output
    skip = jnp.dot(h.astype(wskip_ref.dtype), wskip_ref[...],
                   preferred_element_type=jnp.float32) + bskip_ref[...]
    out_skip_ref[...] = skip.astype(out_skip_ref.dtype)


def wavenet_resblock_nlc(x_blc, t, params, *, kernel_size, dilation,
                         compute_dtype=None, t_tile=None):
    """Channels-last entry point.  x_blc: (B, N, C).  Returns two (B, N, C)."""
    B, N, C = x_blc.shape
    K = kernel_size
    pad = dilation * (K - 1)
    dtype = jnp.dtype(compute_dtype) if compute_dtype is not None else x_blc.dtype
    Cp = max(128, _round_up(C, 128))   # lane-dense channels (no-op if C % 128 == 0)

    # -- time conditioning hoisted out of the T grid: one tiny matmul per batch.
    tc = (t.astype(jnp.float32) @ params['wt'].astype(jnp.float32)
          + params['bt'].astype(jnp.float32))                       # (B, 2C)
    gamma = _pad_last(tc[:, :C], Cp).reshape(B, 1, Cp)
    beta = _pad_last(tc[:, C:], Cp).reshape(B, 1, Cp)

    # -- input: cast to MXU operand dtype, pad channels to the lane width.
    x = _pad_last(x_blc.astype(dtype), Cp)                          # (B, N, Cp)

    if t_tile is None:
        t_tile = _choose_t_tile(N, Cp, pad, jnp.dtype(dtype).itemsize, K)
    assert t_tile % 8 == 0 and t_tile >= pad
    Np = _round_up(N, t_tile)
    if Np != N:
        x = jnp.pad(x, ((0, 0), (0, Np - N), (0, 0)))
    num_t = Np // t_tile

    # -- weights: zero-pad channels; flatten conv taps for one im2col matmul.
    wconv = jnp.zeros((K, Cp, Cp), dtype).at[:, :C, :C].set(
        params['wconv'].astype(dtype)).reshape(K * Cp, Cp)
    wres = jnp.zeros((Cp, Cp), dtype).at[:C, :C].set(params['wres'].astype(dtype))
    wskip = jnp.zeros((Cp, Cp), dtype).at[:C, :C].set(params['wskip'].astype(dtype))
    bconv = _pad_last(params['bconv'].astype(jnp.float32), Cp)      # (1, Cp)
    bres = _pad_last(params['bres'].astype(jnp.float32), Cp)
    bskip = _pad_last(params['bskip'].astype(jnp.float32), Cp)

    x_cur_spec = pl.BlockSpec((None, t_tile, Cp), lambda b, tt: (b, tt, 0))
    x_prev_spec = pl.BlockSpec((None, t_tile, Cp),
                               lambda b, tt: (b, jnp.maximum(tt - 1, 0), 0))
    film_spec = pl.BlockSpec((None, 1, Cp), lambda b, tt: (b, 0, 0))

    def const_spec(shape):
        return pl.BlockSpec(shape, lambda b, tt: (0, 0))

    out_spec = pl.BlockSpec((None, t_tile, Cp), lambda b, tt: (b, tt, 0))

    kernel = functools.partial(_wavenet_resblock_kernel,
                               dilation=dilation, kernel_size=K)

    out_x, out_skip = pl.pallas_call(
        kernel,
        grid=(B, num_t),
        in_specs=[
            x_cur_spec,                    # x (current tile)
            x_prev_spec,                   # x (previous tile, halo)
            film_spec, film_spec,          # gamma, beta
            const_spec((K * Cp, Cp)), const_spec((1, Cp)),   # wconv, bconv
            const_spec((Cp, Cp)), const_spec((1, Cp)),       # wres,  bres
            const_spec((Cp, Cp)), const_spec((1, Cp)),       # wskip, bskip
        ],
        out_specs=(out_spec, out_spec),
        out_shape=(
            jax.ShapeDtypeStruct((B, Np, Cp), dtype),
            jax.ShapeDtypeStruct((B, Np, Cp), dtype),
        ),
        compiler_params=pltpu.CompilerParams(
            dimension_semantics=("parallel", "parallel")),
    )(x, x, gamma, beta, wconv, bconv, wres, bres, wskip, bskip)

    return out_x[:, :N, :C], out_skip[:, :N, :C]


def wavenet_resblock(x_ncl, t, params, *, kernel_size, dilation,
                     compute_dtype=None, t_tile=None):
    """PyTorch-layout adapter.  x_ncl: (B, C, N).  Returns two (B, C, N).

    The NCL<->NLC transposes here are pure API glue; use wavenet_resblock_nlc
    directly to avoid the extra HBM round trips when the caller is channels-last.
    """
    x_blc = jnp.transpose(x_ncl, (0, 2, 1))
    out_x, out_skip = wavenet_resblock_nlc(
        x_blc, t, params, kernel_size=kernel_size, dilation=dilation,
        compute_dtype=compute_dtype, t_tile=t_tile)
    return jnp.transpose(out_x, (0, 2, 1)), jnp.transpose(out_skip, (0, 2, 1))


def _reference(x_ncl, t, params, *, kernel_size, dilation):
    """Pure-JAX f32 reference mirroring the PyTorch forward."""
    B, C, N = x_ncl.shape
    pad = dilation * (kernel_size - 1)
    x = jnp.transpose(x_ncl, (0, 2, 1))                    # (B, N, C)
    x_pad = jnp.pad(x, ((0, 0), (pad, 0), (0, 0)))

    res = jnp.einsum('btc,cd->btd', x, params['wres']) + params['bres']
    h = jnp.zeros((B, N, C), jnp.float32)
    for k in range(kernel_size):
        h = h + jnp.einsum('btc,cd->btd',
                           x_pad[:, k * dilation:k * dilation + N, :],
                           params['wconv'][k])
    h = h + params['bconv']
    tc = t @ params['wt'] + params['bt']
    gamma, beta = tc[:, None, :C], tc[:, None, C:]
    h = h * gamma + beta
    h = jnp.tanh(h) * jax.nn.sigmoid(h)
    h = h + res
    skip = jnp.einsum('btc,cd->btd', h, params['wskip']) + params['bskip']
    return jnp.transpose(h, (0, 2, 1)), jnp.transpose(skip, (0, 2, 1))


if __name__ == "__main__":
    # Module hyperparameters (small demo shapes; channel padding to 128 lanes is
    # a no-op at realistic dims that are multiples of 128).
    dim = 8
    kernel_size = 3
    dilation = 2
    dim_time_mult = 4          # cond_time = True
    B, N = 2, 48

    key = jax.random.PRNGKey(0)
    keys = jax.random.split(key, 10)

    x = jax.random.normal(keys[0], (B, dim, N), dtype=jnp.float32)         # (B, C, N)
    t = jax.random.normal(keys[1], (B, dim * dim_time_mult), dtype=jnp.float32)

    scale = 0.2
    params = {
        # to_time_cond: Linear(dim*mult -> 2*dim), stored as (in, out)
        'wt': scale * jax.random.normal(keys[2], (dim * dim_time_mult, 2 * dim), jnp.float32),
        'bt': scale * jax.random.normal(keys[3], (1, 2 * dim), jnp.float32),
        # conv: CausalConv1d(dim, dim, k, dilation), stored as (k, in, out)
        'wconv': scale * jax.random.normal(keys[4], (kernel_size, dim, dim), jnp.float32),
        'bconv': scale * jax.random.normal(keys[5], (1, dim), jnp.float32),
        # res_conv / skip_conv: 1x1 convs, stored as (in, out)
        'wres': scale * jax.random.normal(keys[6], (dim, dim), jnp.float32),
        'bres': scale * jax.random.normal(keys[7], (1, dim), jnp.float32),
        'wskip': scale * jax.random.normal(keys[8], (dim, dim), jnp.float32),
        'bskip': scale * jax.random.normal(keys[9], (1, dim), jnp.float32),
    }

    ref_x, ref_skip = _reference(x, t, params,
                                 kernel_size=kernel_size, dilation=dilation)

    # f32 run; t_tile=16 forces a multi-tile T grid so the cross-tile causal
    # halo path (and first-tile zero padding) is exercised.
    out_x, out_skip = wavenet_resblock(x, t, params,
                                       kernel_size=kernel_size,
                                       dilation=dilation, t_tile=16)
    jax.block_until_ready((out_x, out_skip))
    assert out_x.shape == (B, dim, N) and out_skip.shape == (B, dim, N)
    assert jnp.allclose(out_x, ref_x, atol=1e-5, rtol=1e-5)
    assert jnp.allclose(out_skip, ref_skip, atol=1e-5, rtol=1e-5)

    # bf16 MXU-operand / HBM-transfer run (f32 accumulation inside), looser tol.
    out_x_bf, out_skip_bf = wavenet_resblock(x, t, params,
                                             kernel_size=kernel_size,
                                             dilation=dilation, t_tile=16,
                                             compute_dtype=jnp.bfloat16)
    jax.block_until_ready((out_x_bf, out_skip_bf))
    assert jnp.allclose(out_x_bf.astype(jnp.float32), ref_x, atol=5e-2, rtol=5e-2)
    assert jnp.allclose(out_skip_bf.astype(jnp.float32), ref_skip, atol=5e-2, rtol=5e-2)

    print("KERNEL_OK")
</pallas_src>

<mosaic_0001>
module attributes {stable_mosaic.version = 11 : i64} {
  func.func @_wavenet_resblock_kernel(%arg0: i32, %arg1: i32, %arg2: memref<1x16x128xf32, #tpu.memory_space<vmem>>, %arg3: memref<1x16x128xf32, #tpu.memory_space<vmem>>, %arg4: memref<1x1x128xf32, #tpu.memory_space<vmem>>, %arg5: memref<1x1x128xf32, #tpu.memory_space<vmem>>, %arg6: memref<384x128xf32, #tpu.memory_space<vmem>>, %arg7: memref<1x128xf32, #tpu.memory_space<vmem>>, %arg8: memref<128x128xf32, #tpu.memory_space<vmem>>, %arg9: memref<1x128xf32, #tpu.memory_space<vmem>>, %arg10: memref<128x128xf32, #tpu.memory_space<vmem>>, %arg11: memref<1x128xf32, #tpu.memory_space<vmem>>, %arg12: memref<1x16x128xf32, #tpu.memory_space<vmem>>, %arg13: memref<1x16x128xf32, #tpu.memory_space<vmem>>) attributes {dimension_semantics = [#tpu.dimension_semantics<parallel>, #tpu.dimension_semantics<parallel>], iteration_bounds = array<i64: 2, 3>, scalar_prefetch = 0 : i64, scratch_operands = 0 : i64, tpu.core_type = #tpu.core_type<tc>, window_params = [{transform_indices = @transform_0, window_bounds = array<i64: 1, 16, 128>}, {transform_indices = @transform_1, window_bounds = array<i64: 1, 16, 128>}, {transform_indices = @transform_2, window_bounds = array<i64: 1, 1, 128>}, {transform_indices = @transform_3, window_bounds = array<i64: 1, 1, 128>}, {pipeline_mode = #tpu.pipeline_mode<synchronous>, transform_indices = @transform_4, window_bounds = array<i64: 384, 128>}, {pipeline_mode = #tpu.pipeline_mode<synchronous>, transform_indices = @transform_5, window_bounds = array<i64: 1, 128>}, {pipeline_mode = #tpu.pipeline_mode<synchronous>, transform_indices = @transform_6, window_bounds = array<i64: 128, 128>}, {pipeline_mode = #tpu.pipeline_mode<synchronous>, transform_indices = @transform_7, window_bounds = array<i64: 1, 128>}, {pipeline_mode = #tpu.pipeline_mode<synchronous>, transform_indices = @transform_8, window_bounds = array<i64: 128, 128>}, {pipeline_mode = #tpu.pipeline_mode<synchronous>, transform_indices = @transform_9, window_bounds = array<i64: 1, 128>}, {transform_indices = @transform_10, window_bounds = array<i64: 1, 16, 128>}, {transform_indices = @transform_11, window_bounds = array<i64: 1, 16, 128>}]} {
    %c0 = arith.constant 0 : index
    %c0_0 = arith.constant 0 : index
    %c0_1 = arith.constant 0 : index
    %0 = vector.load %arg2[%c0, %c0_0, %c0_1] : memref<1x16x128xf32, #tpu.memory_space<vmem>>, vector<1x16x128xf32>
    %1 = vector.shape_cast %0 : vector<1x16x128xf32> to vector<16x128xf32>
    %c0_i32 = arith.constant 0 : i32
    %2 = arith.cmpi sgt, %arg1, %c0_i32 : i32
    %3 = arith.extui %2 : i1 to i32
    %4 = arith.sitofp %3 : i32 to f32
    %c0_2 = arith.constant 0 : index
    %c12 = arith.constant 12 : index
    %c0_3 = arith.constant 0 : index
    %5 = vector.load %arg3[%c0_2, %c12, %c0_3] : memref<1x16x128xf32, #tpu.memory_space<vmem>>, vector<1x4x128xf32>
    %6 = vector.shape_cast %5 : vector<1x4x128xf32> to vector<4x128xf32>
    %7 = vector.broadcast %4 : f32 to vector<4x128xf32>
    %8 = arith.mulf %6, %7 : vector<4x128xf32>
    %9 = tpu.concatenate %8, %1 in 0 : vector<4x128xf32>, vector<16x128xf32> -> vector<20x128xf32>
    %10 = vector.extract_strided_slice %9 {offsets = [0, 0], sizes = [16, 128], strides = [1, 1]} : vector<20x128xf32> to vector<16x128xf32>
    %11 = vector.extract_strided_slice %9 {offsets = [2, 0], sizes = [16, 128], strides = [1, 1]} : vector<20x128xf32> to vector<16x128xf32>
    %12 = tpu.concatenate %10, %11, %1 in 1 : vector<16x128xf32>, vector<16x128xf32>, vector<16x128xf32> -> vector<16x384xf32>
    %c0_4 = arith.constant 0 : index
    %c0_5 = arith.constant 0 : index
    %13 = vector.load %arg6[%c0_4, %c0_5] : memref<384x128xf32, #tpu.memory_space<vmem>>, vector<384x128xf32>
    %cst = arith.constant dense<0.000000e+00> : vector<16x128xf32>
    %14 = tpu.matmul %12, %13, %cst {dimension_numbers = #tpu.dot_dimension_numbers<[1], [0], [0], [1], [0, 0, 1, 1], [], []>} : vector<16x384xf32>, vector<384x128xf32>, vector<16x128xf32> -> vector<16x128xf32>
    %c0_6 = arith.constant 0 : index
    %c0_7 = arith.constant 0 : index
    %15 = vector.load %arg7[%c0_6, %c0_7] : memref<1x128xf32, #tpu.memory_space<vmem>>, vector<1x128xf32>
    %16 = vector.broadcast %15 : vector<1x128xf32> to vector<16x128xf32>
    %17 = arith.addf %14, %16 : vector<16x128xf32>
    %c0_8 = arith.constant 0 : index
    %c0_9 = arith.constant 0 : index
    %18 = vector.load %arg8[%c0_8, %c0_9] : memref<128x128xf32, #tpu.memory_space<vmem>>, vector<128x128xf32>
    %cst_10 = arith.constant dense<0.000000e+00> : vector<16x128xf32>
    %19 = tpu.matmul %1, %18, %cst_10 {dimension_numbers = #tpu.dot_dimension_numbers<[1], [0], [0], [1], [0, 0, 1, 1], [], []>} : vector<16x128xf32>, vector<128x128xf32>, vector<16x128xf32> -> vector<16x128xf32>
    %c0_11 = arith.constant 0 : index
    %c0_12 = arith.constant 0 : index
    %20 = vector.load %arg9[%c0_11, %c0_12] : memref<1x128xf32, #tpu.memory_space<vmem>>, vector<1x128xf32>
    %21 = vector.broadcast %20 : vector<1x128xf32> to vector<16x128xf32>
    %22 = arith.addf %19, %21 : vector<16x128xf32>
    %c0_13 = arith.constant 0 : index
    %c0_14 = arith.constant 0 : index
    %c0_15 = arith.constant 0 : index
    %23 = vector.load %arg4[%c0_13, %c0_14, %c0_15] : memref<1x1x128xf32, #tpu.memory_space<vmem>>, vector<1x1x128xf32>
    %24 = vector.shape_cast %23 : vector<1x1x128xf32> to vector<1x128xf32>
    %25 = vector.broadcast %24 : vector<1x128xf32> to vector<16x128xf32>
    %26 = arith.mulf %17, %25 : vector<16x128xf32>
    %c0_16 = arith.constant 0 : index
    %c0_17 = arith.constant 0 : index
    %c0_18 = arith.constant 0 : index
    %27 = vector.load %arg5[%c0_16, %c0_17, %c0_18] : memref<1x1x128xf32, #tpu.memory_space<vmem>>, vector<1x1x128xf32>
    %28 = vector.shape_cast %27 : vector<1x1x128xf32> to vector<1x128xf32>
    %29 = vector.broadcast %28 : vector<1x128xf32> to vector<16x128xf32>
    %30 = arith.addf %26, %29 : vector<16x128xf32>
    %31 = math.tanh %30 : vector<16x128xf32>
    %32 = arith.negf %30 : vector<16x128xf32>
    %33 = math.exp %32 : vector<16x128xf32>
    %cst_19 = arith.constant 1.000000e+00 : f32
    %34 = vector.broadcast %cst_19 : f32 to vector<16x128xf32>
    %35 = arith.addf %34, %33 : vector<16x128xf32>
    %36 = arith.divf %34, %35 : vector<16x128xf32>
    %37 = arith.mulf %31, %36 : vector<16x128xf32>
    %38 = arith.addf %37, %22 : vector<16x128xf32>
    %c0_20 = arith.constant 0 : index
    %c0_21 = arith.constant 0 : index
    %c0_22 = arith.constant 0 : index
    %39 = vector.load %arg12[%c0_20, %c0_21, %c0_22] : memref<1x16x128xf32, #tpu.memory_space<vmem>>, vector<1x16x128xf32>
    %40 = vector.shape_cast %39 : vector<1x16x128xf32> to vector<16x128xf32>
    %41 = vector.shape_cast %38 : vector<16x128xf32> to vector<1x16x128xf32>
    tpu.vector_store %arg12[%c0_20, %c0_21, %c0_22], %41 {strides = array<i32>} : memref<1x16x128xf32, #tpu.memory_space<vmem>>, vector<1x16x128xf32>,
    %c0_23 = arith.constant 0 : index
    %c0_24 = arith.constant 0 : index
    %42 = vector.load %arg10[%c0_23, %c0_24] : memref<128x128xf32, #tpu.memory_space<vmem>>, vector<128x128xf32>
    %cst_25 = arith.constant dense<0.000000e+00> : vector<16x128xf32>
    %43 = tpu.matmul %38, %42, %cst_25 {dimension_numbers = #tpu.dot_dimension_numbers<[1], [0], [0], [1], [0, 0, 1, 1], [], []>} : vector<16x128xf32>, vector<128x128xf32>, vector<16x128xf32> -> vector<16x128xf32>
    %c0_26 = arith.constant 0 : index
    %c0_27 = arith.constant 0 : index
    %44 = vector.load %arg11[%c0_26, %c0_27] : memref<1x128xf32, #tpu.memory_space<vmem>>, vector<1x128xf32>
    %45 = vector.broadcast %44 : vector<1x128xf32> to vector<16x128xf32>
    %46 = arith.addf %43, %45 : vector<16x128xf32>
    %c0_28 = arith.constant 0 : index
    %c0_29 = arith.constant 0 : index
    %c0_30 = arith.constant 0 : index
    %47 = vector.load %arg13[%c0_28, %c0_29, %c0_30] : memref<1x16x128xf32, #tpu.memory_space<vmem>>, vector<1x16x128xf32>
    %48 = vector.shape_cast %47 : vector<1x16x128xf32> to vector<16x128xf32>
    %49 = vector.shape_cast %46 : vector<16x128xf32> to vector<1x16x128xf32>
    tpu.vector_store %arg13[%c0_28, %c0_29, %c0_30], %49 {strides = array<i32>} : memref<1x16x128xf32, #tpu.memory_space<vmem>>, vector<1x16x128xf32>,
    return
  }
  func.func @transform_0(%arg0: i32, %arg1: i32) -> (i32, i32, i32) {
    %c0_i32 = arith.constant 0 : i32
    %c0_i32_0 = arith.constant 0 : i32
    return %arg0, %arg1, %c0_i32 : i32, i32, i32
  }
  func.func @transform_1(%arg0: i32, %arg1: i32) -> (i32, i32, i32) {
    %c1_i32 = arith.constant 1 : i32
    %0 = arith.subi %arg1, %c1_i32 : i32
    %c0_i32 = arith.constant 0 : i32
    %1 = arith.maxsi %0, %c0_i32 : i32
    %c0_i32_0 = arith.constant 0 : i32
    %c0_i32_1 = arith.constant 0 : i32
    return %arg0, %1, %c0_i32_0 : i32, i32, i32
  }
  func.func @transform_2(%arg0: i32, %arg1: i32) -> (i32, i32, i32) {
    %c0_i32 = arith.constant 0 : i32
    %c0_i32_0 = arith.constant 0 : i32
    %c0_i32_1 = arith.constant 0 : i32
    return %arg0, %c0_i32, %c0_i32_0 : i32, i32, i32
  }
  func.func @transform_3(%arg0: i32, %arg1: i32) -> (i32, i32, i32) {
    %c0_i32 = arith.constant 0 : i32
    %c0_i32_0 = arith.constant 0 : i32
    %c0_i32_1 = arith.constant 0 : i32
    return %arg0, %c0_i32, %c0_i32_0 : i32, i32, i32
  }
  func.func @transform_4(%arg0: i32, %arg1: i32) -> (i32, i32) {
    %c0_i32 = arith.constant 0 : i32
    %c0_i32_0 = arith.constant 0 : i32
    %c0_i32_1 = arith.constant 0 : i32
    return %c0_i32, %c0_i32_0 : i32, i32
  }
  func.func @transform_5(%arg0: i32, %arg1: i32) -> (i32, i32) {
    %c0_i32 = arith.constant 0 : i32
    %c0_i32_0 = arith.constant 0 : i32
    %c0_i32_1 = arith.constant 0 : i32
    return %c0_i32, %c0_i32_0 : i32, i32
  }
  func.func @transform_6(%arg0: i32, %arg1: i32) -> (i32, i32) {
    %c0_i32 = arith.constant 0 : i32
    %c0_i32_0 = arith.constant 0 : i32
    %c0_i32_1 = arith.constant 0 : i32
    return %c0_i32, %c0_i32_0 : i32, i32
  }
  func.func @transform_7(%arg0: i32, %arg1: i32) -> (i32, i32) {
    %c0_i32 = arith.constant 0 : i32
    %c0_i32_0 = arith.constant 0 : i32
    %c0_i32_1 = arith.constant 0 : i32
    return %c0_i32, %c0_i32_0 : i32, i32
  }
  func.func @transform_8(%arg0: i32, %arg1: i32) -> (i32, i32) {
    %c0_i32 = arith.constant 0 : i32
    %c0_i32_0 = arith.constant 0 : i32
    %c0_i32_1 = arith.constant 0 : i32
    return %c0_i32, %c0_i32_0 : i32, i32
  }
  func.func @transform_9(%arg0: i32, %arg1: i32) -> (i32, i32) {
    %c0_i32 = arith.constant 0 : i32
    %c0_i32_0 = arith.constant 0 : i32
    %c0_i32_1 = arith.constant 0 : i32
    return %c0_i32, %c0_i32_0 : i32, i32
  }
  func.func @transform_10(%arg0: i32, %arg1: i32) -> (i32, i32, i32) {
    %c0_i32 = arith.constant 0 : i32
    %c0_i32_0 = arith.constant 0 : i32
    return %arg0, %arg1, %c0_i32 : i32, i32, i32
  }
  func.func @transform_11(%arg0: i32, %arg1: i32) -> (i32, i32, i32) {
    %c0_i32 = arith.constant 0 : i32
    %c0_i32_0 = arith.constant 0 : i32
    return %arg0, %arg1, %c0_i32 : i32, i32, i32
  }
}

</mosaic_0001>

<bundles_post_ra>
// kernel: tpu_custom_call.1
= control target key start
LH: loop header
LB: loop body
LE: loop exit
PB: predicated region body
PF: predicated region fallthrough
CT: control target
= control target key end

     0   :  { %s2445_s0 = inlined_call_operand.hbm [shape: f32[2,48,128], index: 0, kind: input, shape index: {}]   ;;  %s2446_s1 = inlined_call_operand.hbm [shape: f32[2,48,128], index: 1, kind: input, shape index: {}]   ;;  %s2447_s2 = inlined_call_operand.vmem [shape: f32[2,1,128], index: 2, kind: input, shape index: {}]   ;;  %s2448_s3 = inlined_call_operand.vmem [shape: f32[2,1,128], index: 3, kind: input, shape index: {}]   ;;  %s2449_s4 = inlined_call_operand.hbm [shape: f32[384,128], index: 4, kind: input, shape index: {}]   ;;  %s2450_s5 = inlined_call_operand.vmem [shape: f32[1,128], index: 5, kind: input, shape index: {}]   ;;  %s2451_s6 = inlined_call_operand.hbm [shape: f32[128,128], index: 6, kind: input, shape index: {}]   ;;  %s2452_s7 = inlined_call_operand.vmem [shape: f32[1,128], index: 7, kind: input, shape index: {}]   ;;  %s2453_s8 = inlined_call_operand.hbm [shape: f32[128,128], index: 8, kind: input, shape index: {}]   ;;  %s2454_s9 = inlined_call_operand.vmem [shape: f32[1,128], index: 9, kind: input, shape index: {}]   ;;  %s2455_s10 = inlined_call_operand.hbm [shape: f32[2,48,128], index: 10, kind: output, shape index: {0}]   ;;  %s2456_s11 = inlined_call_operand.hbm [shape: f32[2,48,128], index: 11, kind: output, shape index: {1}]  }
   0x1   :  { %2479 = sst [smem:[#allocation31_spill]] %s2445_s0 }
   0x2   :  { %2480 = sst [smem:[#allocation32_spill]] %s2447_s2 }
   0x3   :  { %2481 = sst [smem:[#allocation33_spill]] %s2448_s3 }
   0x4   :  { %2482 = sst [smem:[#allocation34_spill]] %s2449_s4 }
   0x5   :  { %2483 = sst [smem:[#allocation35_spill]] %s2450_s5 }
   0x6   :  { %2484 = sst [smem:[#allocation36_spill]] %s2451_s6 }
   0x7   :  { %2485 = sst [smem:[#allocation37_spill]] %s2452_s7 }
   0x8   :  { %2486 = sst [smem:[#allocation38_spill]] %s2453_s8 }
   0x9   :  { %2487 = sst [smem:[#allocation39_spill]] %s2454_s9 }
   0xa   :  { %2488 = sst [smem:[#allocation40_spill]] %s2455_s10 }
   0xb   :  { %2489 = sst [smem:[#allocation41_spill]] %s2456_s11 }
   0xc   :  { %17 = vsyncpa [#allocation3], 0 }
   0xd   :  { %19 = vsyncpa [#allocation3 + $0x1], 0 }
   0xe   :  { %20 = vsyncpa [#allocation6], 0 }
   0xf   :  { %22 = vsyncpa [#allocation6 + $0x1], 0 }
  0x10   :  { %23 = vsyncpa [#allocation9], 0 }
  0x11   :  { %24 = vsyncpa [#allocation4], 0 }
  0x12   :  { %26 = vsyncpa [#allocation4 + $0x1], 0 }
  0x13   :  { %27 = vsyncpa [#allocation13], 0 }
  0x14   :  { %29 = vsyncpa [#allocation13 + $0x1], 0  ;;  %s2038_s17 = smov 0   ;;  %s2040_s18 = smov 0  }
  0x15   :  { %s2042_s19 = smov 0   ;;  %s2044_s20 = smov 0  }
  0x16   :  { %s2046_s21 = smov 0   ;;  %s2048_s22 = smov 0  }
  0x17   :  { %s2050_s23 = smov 0   ;;  %s2052_s24 = smov 0  }
  0x18   :  { %s2054_s25 = smov 0   ;;  %s2056_s26 = smov 0  }
  0x19   :  { %s2058_s27 = smov 0  }
  0x1a LB: > { %2490 = sst [smem:[#allocation20_spill]] %s1937_s20  ;;  %s2092_s28 = sadd.s32 4294967295, %s1965_s27   ;;  %s1965_s27 = sphi %s2058_s27, %s35_s27   ;;  %s1961_s26 = sphi %s2056_s26, %s2550_s26   ;;  %s1957_s25 = sphi %s2054_s25, %s2542_s25   ;;  %s1953_s24 = sphi %s2052_s24, %s2549_s24   ;;  %s1949_s23 = sphi %s2050_s23, %s2541_s23   ;;  %s1945_s22 = sphi %s2048_s22, %s2540_s22   ;;  %s1941_s21 = sphi %s2046_s21, %s2548_s21   ;;  %s1937_s20 = sphi %s2044_s20, %s2547_s20   ;;  %s1933_s19 = sphi %s2042_s19, %s2546_s19   ;;  %s1929_s18 = sphi %s2040_s18, %s2545_s18   ;;  %s1925_s17 = sphi %s2038_s17, %s2544_s17  }
  0x1b   : > { %2491 = sst [smem:[#allocation21_spill]] %s1945_s22  ;;  %s1271_s29 = sadd.s32 4294967294, %s1965_s27  }
  0x1c   : > { %2492 = sst [smem:[#allocation22_spill]] %s1949_s23  ;;  %p69_p0 = scmp.ne.s32.totalorder %s1941_s21, %s1937_s20 }
  0x1d   : > { %2493 = sst [smem:[#allocation23_spill]] %s1953_s24  ;;  %p2460_p1 = scmp.eq.s32.totalorder %s2092_s28, 0 }
  0x1e   : > { %2494 = sst [smem:[#allocation24_spill]] %s1957_s25  ;;  %p103_p2 = scmp.ne.s32.totalorder %s1929_s18, %s1925_s17 }
  0x1f   : > { %p2102_p4 = por %p2460_p1, %p69_p0  ;;  %p313_p5 = scmp.eq.s32.totalorder %s1271_s29, 5 }
  0x20   : > { %p2108_p6 = por %p103_p2, %p2460_p1  ;;  %p1274_p7 = scmp.ge.s32.totalorder %s1965_s27, 1 }
  0x21   : > { %p2113_p8 = por %p313_p5, %p69_p0  ;;  %p348_p9 = scmp.lt.s32.totalorder %s1965_s27, 7 }
  0x22   : > { %s2496_s12 = scalar_select %p2108_p6, 1, 0 }
  0x23   : > { %s2498_s13 = scalar_select %p2113_p8, 1, 0 }
  0x24   : > { %2497 = sst [smem:[#allocation25_spill]] %s2496_s12  ;;  %p2118_p10 = pnand %p1274_p7, %p348_p9 }
  0x25   : > { %2499 = sst [smem:[#allocation26_spill]] %s2498_s13  ;;  %s1967_s15 = smov [#allocation7]  }
  0x26   : > { %s360_s16 = sshll.u32 %s1967_s15, 4  ;;  %p1530_p11 = pneg %p2118_p10  ;;  %s361_s16 = int_to_ptr.vmem [resolvable:$true] %s360_s16 }
  0x27   : > { %s1968_s29 = smov [#allocation8]   ;;  %s1969_s20 = smov [#allocation10]  }
  0x28   : > { %p2126_p12 = pnand %p1530_p11, %p2460_p1  ;;  %s376_s13 = sshll.u32 %s1968_s29, 4  ;;  %s377_s13 = int_to_ptr.vmem [resolvable:$true] %s376_s13 }
  0x29   : > { %s392_s11 = sshll.u32 %s1969_s20, 4  ;;  %s1680_s9 = scalar_lea.vmem %s361_s16, 6144  ;;  %s393_s11 = int_to_ptr.vmem [resolvable:$true] %s392_s11 }
  0x2a   : > { %p1671_p13 = pneg %p2126_p12  ;;  %p1681_p0 = scmp.ne.s32.totalorder %s361_s16, %s1680_s9 }
  0x2b   : > { %p1688_p7 = scmp.lt.s32.totalorder %s361_s16, %s361_s16  ;;  %p1689_p9 = scmp.lt.s32.totalorder %s1680_s9, %s1680_s9 }
  0x2c   : > { %p1683_p2 = pnand %p1681_p0, %p1671_p13 }
  0x2d   : > { %p1690_p11 = por %p1689_p9, %p1688_p7 }
  0x2e   : > { %p1684_p5 = pneg %p1683_p2 }
  0x30   : > { %p1691_p1 = pnand %p1690_p11, %p1684_p5 }
  0x32   : > { %1694 = shalt.err (!%p1691_p1)
}
  0x33   : > { %s2462_s15 = smov 128   ;;  %s2464_s29 = smov 8  }
  0x34   : > { %s2502_s4 = sld [smem:[#allocation34_spill]]  ;;  %s1706_s7 = scalar_lea.vmem %s377_s13, 2048 }
  0x35   : > { %p1707_p0 = scmp.ne.s32.totalorder %s377_s13, %s1706_s7  ;;  %p1714_p5 = scmp.lt.s32.totalorder %s377_s13, %s377_s13 }
  0x36   : > { %p1715_p1 = scmp.lt.s32.totalorder %s1706_s7, %s1706_s7 }
  0x37   : > { %p1709_p2 = pnand %p1707_p0, %p1671_p13 }
  0x38   : > { %p1716_p9 = por %p1715_p1, %p1714_p5 }
  0x39   : > { %p1710_p7 = pneg %p1709_p2 }
  0x3a   : > { %1533 = dma.hbm_to_vmem [thread:$0]  (!%p2126_p12), %s2502_s4, 6144, %s361_s16, [#allocation6], %s2462_s15, %s2462_s15, %s2464_s29  }
  0x3b   : > { %p1717_p11 = pnand %p1716_p9, %p1710_p7 }
  0x3d   : > { %1720 = shalt.err (!%p1717_p11)
}
  0x3e   : > { %s2503_s6 = sld [smem:[#allocation36_spill]]  ;;  %s1732_s10 = scalar_lea.vmem %s393_s11, 2048 }
  0x3f   : > { %p1733_p3 = scmp.ne.s32.totalorder %s393_s11, %s1732_s10  ;;  %p1740_p5 = scmp.lt.s32.totalorder %s393_s11, %s393_s11 }
  0x40   : > { %p1741_p7 = scmp.lt.s32.totalorder %s1732_s10, %s1732_s10 }
  0x41   : > { %p1735_p0 = pnand %p1733_p3, %p1671_p13 }
  0x42   : > { %p1742_p1 = por %p1741_p7, %p1740_p5 }
  0x43   : > { %p1736_p2 = pneg %p1735_p0 }
  0x44   : > { %1536 = dma.hbm_to_vmem [thread:$0]  (!%p2126_p12), %s2503_s6, 2048, %s377_s13, [#allocation9], %s2462_s15, %s2462_s15, %s2464_s29  }
  0x45   : > { %p1743_p9 = pnand %p1742_p1, %p1736_p2 }
  0x47   : > { %1746 = shalt.err (!%p1743_p9)
}
  0x48   : > { %s2504_s8 = sld [smem:[#allocation38_spill]]  ;;  %s44_s13 = sadd.s32 1, %s1957_s25 }
  0x49   : > { %p45_p3 = scmp.ge.s32.totalorder %s44_s13, 3  ;;  %s47_s16 = sadd.s32 1, %s1961_s26 }
  0x4a   : > { %s56_s17 = sadd.s32 1, %s1945_s22  ;;  %p63_p13 = scmp.ne.s32.totalorder %s1945_s22, %s1941_s21 }
  0x4b   : > { %s2552_s13 = smov (%p45_p3, %s44_s13), 0  ;;  %s2554_s16 = smov (!%p45_p3, %s47_s16), %s1961_s26 }
  0x4c   : > { %2505 = sst [smem:[#allocation27_spill]] %s2552_s13  ;;  %s52_s20 = ssub.s32 %s1957_s25, %s2552_s13 }
  0x4d   : > { %p2472_p11 = scmp.eq.s32.totalorder %s1965_s27, 0  ;;  %p49_p0 = scmp.ge.s32.totalorder %s2554_s16, 2 }
  0x4e   : > { %1539 = dma.hbm_to_vmem [thread:$0]  (!%p2126_p12), %s2504_s8, 2048, %s393_s11, [#allocation9], %s2462_s15, %s2462_s15, %s2464_s29  }
  0x4f   : > { %p2506_p2 = scmp.eq.s32.totalorder %s2092_s28, 5  ;;  %p2184_p12 = por %p2472_p11, %p63_p13 }
  0x50   : > { %p2471_p7 = scmp.lt.s32.totalorder %s1965_s27, 6  ;;  %s2556_s16 = smov (%p49_p0, %s2554_s16), 0 }
  0x51   : > { %p2178_p5 = por %p2506_p2, %p63_p13  ;;  %2510 = sst [smem:[#allocation29_spill]] %s2556_s16 }
  0x52   : > { %s409_s10 = sand.u32 1, %s1945_s22   ;;  %s1280_s3 = sshll.u32 %s1957_s25, 1 }
  0x53   : > { %s2507_s11 = scalar_select %p2178_p5, 1, 0 }
  0x54   : > { %s2195_s7 = ssub.s32 %s1961_s26, %s2556_s16  ;;  %s1279_s29 = sshll.u32 %s409_s10, 4 }
  0x55   : > { %2508 = sst [smem:[#allocation28_spill]] %s2507_s11  ;;  %s53_s15 = sor.u32 %s52_s20, %s2195_s7 }
  0x56   : > { %p54_p1 = scmp.eq.s32.totalorder %s53_s15, 0  ;;  %s1506_s4 = smul.u32 6, %s1961_s26 }
  0x57   : > { %s413_s6 = scalar_lea.vmem [#allocation2], %s1279_s29  ;;  %p2208_p9 = pnand %p2471_p7, %p2184_p12 }
  0x58   : > { %s422_s8 = sshll.u32 %s413_s6, 4  ;;  %s419_s2 = sadd.s32 %s1506_s4, %s1280_s3  ;;  %s423_s8 = int_to_ptr.vmem [resolvable:$true] %s422_s8 }
  0x59   : > { %s2200_s11 = scalar_select %p54_p1, %s1945_s22, %s56_s17  }
  0x5a   : > { %s1281_s5 = sshll.u32 %s419_s2, 7  ;;  %s2513_s0 = sld [smem:[#allocation31_spill]] }
  0x5b   : > { %2511 = sst [smem:[#allocation30_spill]] %s2200_s11  ;;  %s410_s20 = scalar_lea.sflag [#allocation3], %s409_s10 }
  0x5c   : > { %p1749_p3 = pneg %p2208_p9  ;;  %s1760_s6 = scalar_lea.vmem %s423_s8, 256 }
  0x5d   : > { %p1761_p13 = scmp.ne.s32.totalorder %s423_s8, %s1760_s6  ;;  %s1972_s29 = smov [#allocation2]  }
  0x5e   : > { %s1765_s2 = sshll.u32 %s1972_s29, 4  ;;  %s1766_s2 = int_to_ptr.vmem [resolvable:$false] %s1765_s2 }
  0x5f   : > { %p1763_p0 = pnand %p1761_p13, %p1749_p3  ;;  %s1767_s17 = scalar_lea.vmem %s1766_s2, 512 }
  0x60   : > { %s421_s15 = scalar_lea.hbm %s2513_s0, %s1281_s5  ;;  %p1768_p12 = scmp.lt.s32.totalorder %s423_s8, %s1766_s2 }
  0x61   : > { %p1764_p2 = pneg %p1763_p0  ;;  %p1769_p1 = scmp.lt.s32.totalorder %s1767_s17, %s1760_s6 }
  0x63   : > { %p1770_p7 = por %p1769_p1, %p1768_p12 }
  0x65   : > { %p1771_p11 = pnand %p1770_p7, %p1764_p2 }
  0x67   : > { %1774 = shalt.err (!%p1771_p11)
}
  0x68   : > { %s2514_s23 = smov 8   ;;  %s2515_s5 = smov 128  }
  0x69   : > { %1543 = dma.hbm_to_vmem [thread:$0]  (!%p2208_p9), %s421_s15, 256, %s423_s8, %s410_s20, %s2515_s5, %s2515_s5, %s2514_s23  }
  0x6a   : > { %s1272_s16 = sadd.s32 4294967295, %s1957_s25  ;;  %s1273_s9 = sadd.s32 4294967295, %s2552_s13 }
  0x6b   : > { %p80_p11 = scmp.gt.s32.totalorder %s1272_s16, 0  ;;  %p83_p7 = scmp.gt.s32.totalorder %s1273_s9, 0 }
  0x6c   : > { %s90_s24 = sadd.s32 1, %s1933_s19  ;;  %p97_p3 = scmp.ne.s32.totalorder %s1933_s19, %s1929_s18 }
  0x6d   : > { %s2558_s16 = smov (!%p80_p11, %s1272_s16), 0  ;;  %s2560_s9 = smov (!%p83_p7, %s1273_s9), 0 }
  0x6e   : > { %p2516_p13 = scmp.eq.s32.totalorder %s1965_s27, 0  ;;  %s432_s3 = sand.u32 1, %s1965_s27  }
  0x6f   : > { %s86_s6 = ssub.s32 %s2558_s16, %s2560_s9  ;;  %s434_s15 = sand.u32 1, %s1933_s19  }
  0x70   : > { %p2229_p0 = por %p97_p3, %p2516_p13  ;;  %s87_s8 = sor.u32 %s86_s6, %s2195_s7 }
  0x71   : > { %p88_p9 = scmp.eq.s32.totalorder %s87_s8, 0  ;;  %s1282_s20 = sshll.u32 %s434_s15, 4 }
  0x72   : > { %s1284_s29 = sshll.u32 %s2558_s16, 1  ;;  %s436_s0 = scalar_lea.vmem [#allocation5], %s1282_s20 }
  0x73   : > { %s2237_s2 = scalar_select %p88_p9, %s1933_s19, %s90_s24  }
  0x74   : > { %s445_s17 = sadd.s32 %s1506_s4, %s1284_s29  ;;  %s448_s13 = sshll.u32 %s436_s0, 4  ;;  %s449_s13 = int_to_ptr.vmem [resolvable:$true] %s448_s13 }
  0x75   : > { %s1285_s25 = sshll.u32 %s445_s17, 7  ;;  %p2518_p2 = scmp.lt.s32.totalorder %s1965_s27, 6 }
  0x76   : > { %s447_s12 = scalar_lea.hbm %s2446_s1, %s1285_s25  ;;  %s433_s16 = scalar_lea.sflag [#allocation6], %s432_s3 }
  0x77   : > { %p2248_p12 = pnand %p2518_p2, %p2229_p0  ;;  %s1788_s9 = scalar_lea.vmem %s449_s13, 256 }
  0x78   : > { %p1789_p11 = scmp.ne.s32.totalorder %s449_s13, %s1788_s9  ;;  %s1973_s0 = smov [#allocation5]  }
  0x79   : > { %p1777_p1 = pneg %p2248_p12  ;;  %s1793_s4 = sshll.u32 %s1973_s0, 4  ;;  %s1794_s4 = int_to_ptr.vmem [resolvable:$false] %s1793_s4 }
  0x7a   : > { %s1795_s24 = scalar_lea.vmem %s1794_s4, 512  ;;  %p1796_p13 = scmp.lt.s32.totalorder %s449_s13, %s1794_s4 }
  0x7b   : > { %p1791_p7 = pnand %p1789_p11, %p1777_p1  ;;  %p1797_p9 = scmp.lt.s32.totalorder %s1795_s24, %s1788_s9 }
  0x7d   : > { %p1792_p3 = pneg %p1791_p7  ;;  %p1798_p8 = por %p1797_p9, %p1796_p13 }
  0x7f   : > { %p1799_p5 = pnand %p1798_p8, %p1792_p3 }
  0x81   : > { %1802 = shalt.err (!%p1799_p5)
}
  0x82   : > { %1546 = dma.hbm_to_vmem [thread:$0]  (!%p2248_p12), %s447_s12, 256, %s449_s13, %s433_s16, %s2515_s5, %s2515_s5, %s2514_s23  }
  0x83   : > { %472 = sbr.rel (%p2118_p10) target bundleno = 637 (0x27d), region = 60  ;;  %s2262_s22 = sand.u32 (!%p2118_p10), 1, %s1941_s21  }
  0x84   : > { %s2265_s25 = sshll.u32 (!%p2118_p10), %s2262_s22, 4  ;;  %s475_s11 = scalar_lea.sflag (!%p2118_p10), [#allocation3], %s2262_s22 }
  0x85   : > { %s478_s10 = scalar_lea.vmem (!%p2118_p10), [#allocation2], %s2265_s25 }
  0x88   : > { %1900 = dma.done.wait (%p2102_p4), %s475_s11, 256  }
  0x89   : > { %1902 = vsyncadd (%p2102_p4), %s475_s11, 4294967040  ;;  %s483_s14 = sand.u32 1, %s2092_s28   ;;  %s485_s13 = sand.u32 1, %s1929_s18  }
  0x8a   : > { %s2275_s23 = sshll.u32 %s485_s13, 4  ;;  %s484_s5 = scalar_lea.sflag [#allocation6], %s483_s14 }
  0x8b   : > { %s487_s3 = scalar_lea.vmem [#allocation5], %s2275_s23 }
  0x8c   : > { %1904 = dma.done.wait (%p2108_p6), %s484_s5, 256  }
  0x8d   : > { %1906 = vsyncadd (%p2108_p6), %s484_s5, 4294967040  ;;  %p2521_p8 = scmp.eq.s32.totalorder %s2092_s28, 0 }
  0x8f   : > { %1908 = dma.done.wait (%p2521_p8), [#allocation6], 6144   ;;  %p2522_p4 = pmov %p2521_p8 }
  0x91   : > { %1910 = vsyncadd (%p2522_p4), [#allocation6], 4294961152  ;;  %p2523_p10 = pmov %p2522_p4 }
  0x92   : > { %p2524_p5 = pmov %p2522_p4 }
  0x93   : > { %1912 = dma.done.wait (%p2523_p10), [#allocation9], 4096  }
  0x94   : > { %1914 = vsyncadd (%p2524_p5), [#allocation9], 4294963200  ;;  %s2525_s30 = sld [smem:[#allocation22_spill]]  ;;  %v624_v0 = vld [vmem:[#allocation7 + $0xf8] sm:$0xff]  ;;  %v623_v2 = vld [vmem:[#allocation7 + $0xf0] sm:$0xff]  ;;  %vm577_vm0 = vcmask 1043456  }
  0x95   : > { %v608_v1 = vld [vmem:[#allocation7 + $0x78] sm:$0xff]  ;;  %1309 = vmatprep.subr.mxu0 %v624_v0  ;;  %v607_v3 = vld [vmem:[#allocation7 + $0x70] sm:$0xff]  ;;  %v622_v5 = vld [vmem:[#allocation7 + $0xe8] sm:$0xff]  ;;  %vm585_vm1 = vcmask 1045504   ;;  %s2526_s8 = sld [smem:[#allocation23_spill]]  ;;  %s546_s23 = scalar_lea.vmem [#allocation11], %s2265_s25 }
  0x96   : > { %v640_v4 = vld [vmem:[#allocation7 + $0x178] sm:$0xff]  ;;  %1310 = vmatpush3.msra.mxu0 %v608_v1  ;;  %v639_v6 = vld [vmem:[#allocation7 + $0x170] sm:$0xff]  ;;  %v606_v7 = vld [vmem:[#allocation7 + $0x68] sm:$0xff]  ;;  %s2527_s17 = sld [smem:[#allocation35_spill]] }
  0x97   : > { %1401 = vmatprep.subr.mxu1 %v640_v4  ;;  %1311 = vmatprep.subr.mxu0 %v623_v2  ;;  %v638_v8 = vld [vmem:[#allocation7 + $0x168] sm:$0xff]  ;;  %v621_v9 = vld [vmem:[#allocation7 + $0xe0] sm:$0xff]  ;;  %v620_v12 = vld [vmem:[#allocation7 + $0xd8] sm:$0xff]  ;;  %s2528_s9 = sld [smem:[#allocation32_spill]] }
  0x98   : > { %1402 = vmatpush3.msra.mxu1 %v640_v4  ;;  %1312 = vmatpush3.msra.mxu0 %v607_v3  ;;  %v605_v10 = vld [vmem:[#allocation7 + $0x60] sm:$0xff]  ;;  %v604_v13 = vld [vmem:[#allocation7 + $0x58] sm:$0xff]  ;;  %v619_v15 = vld [vmem:[#allocation7 + $0xd0] sm:$0xff]  ;;  %s2529_s11 = sld [smem:[#allocation33_spill]] }
  0x99   : > { %1403 = vmatprep.subr.mxu1 %v639_v6  ;;  %1313 = vmatprep.subr.mxu0 %v622_v5  ;;  %v637_v11 = vld [vmem:[#allocation7 + $0x160] sm:$0xff]  ;;  %v636_v14 = vld [vmem:[#allocation7 + $0x158] sm:$0xff]  ;;  %v603_v16 = vld [vmem:[#allocation7 + $0x50] sm:$0xff]  ;;  %s2530_s13 = sld [smem:[#allocation37_spill]] }
  0x9a   : > { %p569_p6 = scmp.gt.s32.totalorder %s2525_s30, 0  ;;  %1404 = vmatpush3.msra.mxu1 %v639_v6  ;;  %1314 = vmatpush3.msra.mxu0 %v606_v7  ;;  %v635_v17 = vld [vmem:[#allocation7 + $0x150] sm:$0xff]  ;;  %v618_v18 = vld [vmem:[#allocation7 + $0xc8] sm:$0xff]  ;;  %v617_v21 = vld [vmem:[#allocation7 + $0xc0] sm:$0xff]  ;;  %s2531_s5 = sld [smem:[#allocation28_spill]] }
  0x9b   : > { %1405 = vmatprep.subr.mxu1 %v638_v8  ;;  %1315 = vmatprep.subr.mxu0 %v621_v9  ;;  %v602_v19 = vld [vmem:[#allocation7 + $0x48] sm:$0xff]  ;;  %v601_v22 = vld [vmem:[#allocation7 + $0x40] sm:$0xff]  ;;  %v616_v24 = vld [vmem:[#allocation7 + $0xb8] sm:$0xff]  ;;  %p559_p0 = scmp.lt.s32.totalorder %s2526_s8, 1  ;;  %s2532_s7 = sld [smem:[#allocation40_spill]] }
  0x9c   : > { %s2293_s28 = scalar_select %p569_p6, 1, 0  ;;  %1406 = vmatpush3.msra.mxu1 %v638_v8  ;;  %1316 = vmatpush3.msra.mxu0 %v605_v10  ;;  %v634_v20 = vld [vmem:[#allocation7 + $0x148] sm:$0xff]  ;;  %v633_v23 = vld [vmem:[#allocation7 + $0x140] sm:$0xff]  ;;  %v600_v25 = vld [vmem:[#allocation7 + $0x38] sm:$0xff] }
  0x9d   : > { %1407 = vmatprep.subr.mxu1 %v637_v11  ;;  %1317 = vmatprep.subr.mxu0 %v620_v12  ;;  %v632_v27 = vld [vmem:[#allocation7 + $0x138] sm:$0xff]  ;;  %v2298_v28 = vld [vmem:[%s478_s10] sm:$0xff]  ;;  %v614_v37 = vld [vmem:[#allocation7 + $0xa8] sm:$0xff]  ;;  %s560_s15 = scalar_select %p559_p0, %s2526_s8, 1 }
  0x9e   : > { %1408 = vmatpush3.msra.mxu1 %v637_v11  ;;  %1318 = vmatpush3.msra.mxu0 %v604_v13  ;;  %s571_s6 = scvt.s32.f32 %s2293_s28  ;;  %v2302_v29 = vld [vmem:[%s478_s10 + $0x8] sm:$0xff]  ;;  %v615_v30 = vld [vmem:[#allocation7 + $0xb0] sm:$0xff]  ;;  %v578_v32 = vrot.slane %v2298_v28, 4  ;;  %v613_v42 = vld [vmem:[#allocation7 + $0xa0] sm:$0xff]  ;;  %s1508_s28 = smul.u32 6, %s2526_s8 }
  0x9f   : > { %1409 = vmatprep.subr.mxu1 %v636_v14  ;;  %1319 = vmatprep.subr.mxu0 %v619_v15  ;;  %v572_v31 = vld [vmem:[%s487_s3 + $0xc] sm:$0xf]  ;;  %v579_v33 = vrot.slane %v2302_v29, 4  ;;  %v599_v34 = vld [vmem:[#allocation7 + $0x30] sm:$0xff]  ;;  %v597_v43 = vld [vmem:[#allocation7 + $0x20] sm:$0xff]  ;;  %s561_s0 = scalar_lea.vmem %s2528_s9, %s560_s15  ;;  %s564_s10 = scalar_lea.vmem %s2529_s11, %s560_s15 }
  0xa0   : > { %1410 = vmatpush3.msra.mxu1 %v636_v14  ;;  %1320 = vmatpush3.msra.mxu0 %v603_v16  ;;  %v573_v26 = vstv %s571_s6  ;;  %v631_v35 = vld [vmem:[#allocation7 + $0x130] sm:$0xff]  ;;  %v598_v38 = vld [vmem:[#allocation7 + $0x28] sm:$0xff]  ;;  %v629_v44 = vld [vmem:[#allocation7 + $0x120] sm:$0xff]  ;;  %s1055_s3 = sshll.u32 %s546_s23, 4  ;;  %s1303_s6 = sshll.u32 %s2525_s30, 1  ;;  %s2335_s3 = int_to_ptr.vmem [resolvable:$true] %s1055_s3 }
  0xa1   : > { %1411 = vmatprep.subr.mxu1 %v635_v17  ;;  %1321 = vmatprep.subr.mxu0 %v618_v18  ;;  %v574_v36 = vmul.f32 %v573_v26, %v572_v31  ;;  %v630_v39 = vld [vmem:[#allocation7 + $0x128] sm:$0xff]  ;;  %v580_v40 = vsel %vm577_vm0, %v578_v32, %v579_v33  ;;  %v612_v45 = vld [vmem:[#allocation7 + $0x98] sm:$0xff]  ;;  %v611_v50 = vld [vmem:[#allocation7 + $0x90] sm:$0xff]  ;;  %v589_v56 = vrot.slane %v579_v33, 2  ;;  %s2333_s15 = sadd.s32 %s1508_s28, %s1303_s6  ;;  %s1035_s9 = scalar_lea.sflag [#allocation4], %s2262_s22 }
  0xa2   : > { %1412 = vmatpush3.msra.mxu1 %v635_v17  ;;  %1322 = vmatpush3.msra.mxu0 %v602_v19  ;;  %v587_v47 = vrot.slane %v580_v40, 2  ;;  %v596_v48 = vld [vmem:[#allocation7 + $0x18] sm:$0xff]  ;;  %v595_v51 = vld [vmem:[#allocation7 + $0x10] sm:$0xff]  ;;  %v610_v53 = vld [vmem:[#allocation7 + $0x88] sm:$0xff]  ;;  %s1304_s20 = sshll.u32 %s2333_s15, 7  ;;  %p2533_p12 = scmp.ne.s32.totalorder %s2531_s5, 0 }
  0xa3   : > { %1413 = vmatprep.subr.mxu1 %v634_v20  ;;  %1323 = vmatprep.subr.mxu0 %v617_v21  ;;  %v583_v41 = vsel %vm577_vm0, %v574_v36, %v578_v32  ;;  %v628_v49 = vld [vmem:[#allocation7 + $0x118] sm:$0xff]  ;;  %v627_v52 = vld [vmem:[#allocation7 + $0x110] sm:$0xff]  ;;  %v594_v55 = vld [vmem:[#allocation7 + $0x8] sm:$0xff]  ;;  %s2343_s16 = scalar_lea.hbm %s2532_s7, %s1304_s20  ;;  %s1974_s30 = smov [#allocation11]  }
  0xa4   : > { %1414 = vmatpush3.msra.mxu1 %v634_v20  ;;  %1324 = vmatpush3.msra.mxu0 %v601_v22  ;;  %v586_v46 = vrot.slane %v583_v41, 2  ;;  %v609_v57 = vld [vmem:[#allocation7 + $0x80] sm:$0xff]  ;;  %v626_v58 = vld [vmem:[#allocation7 + $0x108] sm:$0xff]  ;;  %v590_v61 = vsel %vm585_vm1, %v587_v47, %v589_v56  ;;  %v813_v62 = vld [vmem:[#allocation8 + $0x78] sm:$0xff]  ;;  %s1807_s8 = sshll.u32 %s1974_s30, 4  ;;  %s1808_s8 = int_to_ptr.vmem [resolvable:$false] %s1807_s8 }
  0xa5   : > { %1415 = vmatprep.subr.mxu1 %v633_v23  ;;  %1325 = vmatprep.subr.mxu0 %v616_v24  ;;  %v593_v59 = vld [vmem:[#allocation7] sm:$0xff]  ;;  %v812_v63 = vld [vmem:[#allocation8 + $0x70] sm:$0xff]  ;;  %v811_v0 = vld [vmem:[#allocation8 + $0x68] sm:$0xff]  ;;  %s1809_s4 = scalar_lea.vmem %s1808_s8, 512  ;;  %p1810_p7 = scmp.lt.s32.totalorder %s2335_s3, %s1808_s8 }
  0xa6   : > { %1416 = vmatpush3.msra.mxu1 %v633_v23  ;;  %1326 = vmatpush3.msra.mxu0 %v600_v25  ;;  %v588_v54 = vsel %vm585_vm1, %v586_v46, %v587_v47  ;;  %v625_v60 = vld [vmem:[#allocation7 + $0x100] sm:$0xff]  ;;  %v809_v2 = vld [vmem:[#allocation8 + $0x58] sm:$0xff]  ;;  %v808_v3 = vld [vmem:[#allocation8 + $0x50] sm:$0xff] }
  0xa7   : > { %1417 = vmatprep.subr.mxu1 %v632_v27  ;;  %1327 = vmatprep.subr.mxu0 %v615_v30  ;;  %v810_v1 = vld [vmem:[#allocation8 + $0x60] sm:$0xff]  ;;  %v807_v4 = vld [vmem:[#allocation8 + $0x48] sm:$0xff]  ;;  %v805_v6 = vld [vmem:[#allocation8 + $0x38] sm:$0xff] }
  0xa8   : > { %1418 = vmatpush3.msra.mxu1 %v632_v27  ;;  %1328 = vmatpush3.msra.mxu0 %v599_v34  ;;  %v806_v5 = vld [vmem:[#allocation8 + $0x40] sm:$0xff]  ;;  %v804_v7 = vld [vmem:[#allocation8 + $0x30] sm:$0xff]  ;;  %v803_v8 = vld [vmem:[#allocation8 + $0x28] sm:$0xff] }
  0xa9   : > { %1419 = vmatprep.subr.mxu1 %v631_v35  ;;  %1329 = vmatprep.subr.mxu0 %v614_v37  ;;  %v802_v9 = vld [vmem:[#allocation8 + $0x20] sm:$0xff]  ;;  %v801_v10 = vld [vmem:[#allocation8 + $0x18] sm:$0xff]  ;;  %v800_v11 = vld [vmem:[#allocation8 + $0x10] sm:$0xff] }
  0xaa   : > { %1420 = vmatpush3.msra.mxu1 %v631_v35  ;;  %1330 = vmatpush3.msra.mxu0 %v598_v38  ;;  %v799_v12 = vld [vmem:[#allocation8 + $0x8] sm:$0xff]  ;;  %v798_v13 = vld [vmem:[#allocation8] sm:$0xff]  ;;  %v949_v14 = vld [vmem:[#allocation10 + $0x78] sm:$0xff] }
  0xab   : > { %1421 = vmatprep.subr.mxu1 %v630_v39  ;;  %1331 = vmatprep.subr.mxu0 %v613_v42  ;;  %v948_v15 = vld [vmem:[#allocation10 + $0x70] sm:$0xff]  ;;  %v947_v16 = vld [vmem:[#allocation10 + $0x68] sm:$0xff]  ;;  %v946_v17 = vld [vmem:[#allocation10 + $0x60] sm:$0xff] }
  0xac   : > { %1422 = vmatpush3.msra.mxu1 %v630_v39  ;;  %1332 = vmatpush3.msra.mxu0 %v597_v43  ;;  %v945_v18 = vld [vmem:[#allocation10 + $0x58] sm:$0xff]  ;;  %v944_v19 = vld [vmem:[#allocation10 + $0x50] sm:$0xff]  ;;  %v943_v20 = vld [vmem:[#allocation10 + $0x48] sm:$0xff] }
  0xad   : > { %1423 = vmatprep.subr.mxu1 %v629_v44  ;;  %1333 = vmatprep.subr.mxu0 %v612_v45  ;;  %v942_v21 = vld [vmem:[#allocation10 + $0x40] sm:$0xff]  ;;  %v941_v22 = vld [vmem:[#allocation10 + $0x38] sm:$0xff]  ;;  %v940_v23 = vld [vmem:[#allocation10 + $0x30] sm:$0xff] }
  0xae   : > { %1424 = vmatpush3.msra.mxu1 %v629_v44  ;;  %1334 = vmatpush3.msra.mxu0 %v596_v48  ;;  %v939_v24 = vld [vmem:[#allocation10 + $0x28] sm:$0xff]  ;;  %v938_v25 = vld [vmem:[#allocation10 + $0x20] sm:$0xff]  ;;  %v937_v26 = vld [vmem:[#allocation10 + $0x18] sm:$0xff] }
  0xaf   : > { %1425 = vmatprep.subr.mxu1 %v628_v49  ;;  %1335 = vmatprep.subr.mxu0 %v611_v50  ;;  %v936_v27 = vld [vmem:[#allocation10 + $0x10] sm:$0xff]  ;;  %v1294_v32 = vld [vmem:[%s2527_s17] ss:$0 sm:$0xff] }
  0xb0   : > { %1426 = vmatpush3.msra.mxu1 %v628_v49  ;;  %1336 = vmatpush3.msra.mxu0 %v595_v51  ;;  %v1296_v39 = vld [vmem:[%s561_s0] ss:$0 sm:$0xff]  ;;  %s1803_s0 = scalar_lea.vmem %s2335_s3, 256 }
  0xb1   : > { %1427 = vmatprep.subr.mxu1 %v627_v52  ;;  %1337 = vmatprep.subr.mxu0 %v610_v53  ;;  %v1297_v42 = vld [vmem:[%s564_s10] ss:$0 sm:$0xff]  ;;  %p1804_p2 = scmp.ne.s32.totalorder %s2335_s3, %s1803_s0  ;;  %p1811_p3 = scmp.lt.s32.totalorder %s1809_s4, %s1803_s0 }
  0xb2   : > { %712 = vmatprep.mubr.f32.mxu0 %v588_v54  ;;  %1338 = vmatpush3.msra.mxu0 %v594_v55  ;;  %v1295_v56 = vld [vmem:[%s2530_s13] ss:$0 sm:$0xff] }
  0xb3   : > { %1428 = vmatpush3.msra.mxu1 %v627_v52  ;;  %1339 = vmatprep.subr.mxu0 %v609_v57  ;;  %p1805_p1 = pnand %p1804_p2, %p2533_p12  ;;  %p1812_p13 = por %p1811_p3, %p1810_p7 }
  0xb4   : > { %1429 = vmatprep.subr.mxu1 %v626_v58  ;;  %1340 = vmatpush3.msra.mxu0 %v593_v59 }
  0xb5   : > { %1430 = vmatpush3.msra.mxu1 %v626_v58  ;;  %713 = vmatmul.mubr.f32.vlgmr.msra.gmra.mxu0 %v583_v41  ;;  %p1806_p11 = pneg %p1805_p1 }
  0xb6   : > { %1431 = vmatprep.subr.mxu1 %v625_v60  ;;  %717 = vmatprep.mubr.f32.mxu0 %v590_v61 }
  0xb7   : > { %1432 = vmatpush3.msra.mxu1 %v625_v60  ;;  %1433 = vmatprep.mubr.f32.mxu1 %v2298_v28  ;;  %p1813_p9 = pnand %p1812_p13, %p1806_p11 }
  0xb8   : > { %1436 = vmatprep.subr.mxu0 %v813_v62  ;;  %1434 = vmatmul.mubr.f32.vlgmr.msra.gmra.mxu1 %v2302_v29 }
  0xb9   : > { %1437 = vmatpush3.msra.mxu0 %v813_v62  ;;  %1471 = vmatprep.subr.mxu1 %v949_v14 }
  0xba   : > { %718 = vmatmul.mubr.f32.gmra.mxu0 %v580_v40  ;;  %1438 = vmatprep.subr.mxu0 %v812_v63 }
  0xbb   : > { %1439 = vmatpush3.msra.mxu0 %v812_v63  ;;  %1468 = vmatprep.mubr.f32.mxu0 %v2298_v28  ;;  %v935_v28 = vld [vmem:[#allocation10 + $0x8] sm:$0xff] }
  0xbc   : > { %1440 = vmatprep.subr.mxu0 %v811_v0  ;;  %1472 = vmatpush3.msra.mxu1 %v949_v14 }
  0xbd   : > { %1441 = vmatpush3.msra.mxu0 %v811_v0  ;;  %1473 = vmatprep.subr.mxu1 %v948_v15 }
  0xbe   : > { %1442 = vmatprep.subr.mxu0 %v810_v1  ;;  %1474 = vmatpush3.msra.mxu1 %v948_v15 }
  0xbf   : > { %1443 = vmatpush3.msra.mxu0 %v810_v1  ;;  %1475 = vmatprep.subr.mxu1 %v947_v16 }
  0xc0   : > { %1444 = vmatprep.subr.mxu0 %v809_v2  ;;  %1476 = vmatpush3.msra.mxu1 %v947_v16 }
  0xc1   : > { %1445 = vmatpush3.msra.mxu0 %v809_v2  ;;  %1477 = vmatprep.subr.mxu1 %v946_v17 }
  0xc2   : > { %1446 = vmatprep.subr.mxu0 %v808_v3  ;;  %1478 = vmatpush3.msra.mxu1 %v946_v17 }
  0xc3   : > { %1447 = vmatpush3.msra.mxu0 %v808_v3  ;;  %1479 = vmatprep.subr.mxu1 %v945_v18 }
  0xc4   : > { %1448 = vmatprep.subr.mxu0 %v807_v4  ;;  %1480 = vmatpush3.msra.mxu1 %v945_v18 }
  0xc5   : > { %1449 = vmatpush3.msra.mxu0 %v807_v4  ;;  %1481 = vmatprep.subr.mxu1 %v944_v19 }
  0xc6   : > { %1450 = vmatprep.subr.mxu0 %v806_v5  ;;  %1482 = vmatpush3.msra.mxu1 %v944_v19 }
  0xc7   : > { %1451 = vmatpush3.msra.mxu0 %v806_v5  ;;  %1483 = vmatprep.subr.mxu1 %v943_v20 }
  0xc8   : > { %1452 = vmatprep.subr.mxu0 %v805_v6  ;;  %1484 = vmatpush3.msra.mxu1 %v943_v20 }
  0xc9   : > { %1453 = vmatpush3.msra.mxu0 %v805_v6  ;;  %1485 = vmatprep.subr.mxu1 %v942_v21 }
  0xca   : > { %1454 = vmatprep.subr.mxu0 %v804_v7  ;;  %1486 = vmatpush3.msra.mxu1 %v942_v21 }
  0xcb   : > { %1455 = vmatpush3.msra.mxu0 %v804_v7  ;;  %1487 = vmatprep.subr.mxu1 %v941_v22 }
  0xcc   : > { %1456 = vmatprep.subr.mxu0 %v803_v8  ;;  %1488 = vmatpush3.msra.mxu1 %v941_v22 }
  0xcd   : > { %1457 = vmatpush3.msra.mxu0 %v803_v8  ;;  %1489 = vmatprep.subr.mxu1 %v940_v23 }
  0xce   : > { %1458 = vmatprep.subr.mxu0 %v802_v9  ;;  %1490 = vmatpush3.msra.mxu1 %v940_v23 }
  0xcf   : > { %1459 = vmatpush3.msra.mxu0 %v802_v9  ;;  %1491 = vmatprep.subr.mxu1 %v939_v24 }
  0xd0   : > { %1460 = vmatprep.subr.mxu0 %v801_v10  ;;  %1492 = vmatpush3.msra.mxu1 %v939_v24 }
  0xd1   : > { %1461 = vmatpush3.msra.mxu0 %v801_v10  ;;  %1493 = vmatprep.subr.mxu1 %v938_v25 }
  0xd2   : > { %1462 = vmatprep.subr.mxu0 %v800_v11  ;;  %1494 = vmatpush3.msra.mxu1 %v938_v25 }
  0xd3   : > { %1463 = vmatpush3.msra.mxu0 %v800_v11  ;;  %1495 = vmatprep.subr.mxu1 %v937_v26 }
  0xd4   : > { %1464 = vmatprep.subr.mxu0 %v799_v12  ;;  %1496 = vmatpush3.msra.mxu1 %v937_v26 }
  0xd5   : > { %1465 = vmatpush3.msra.mxu0 %v799_v12  ;;  %1497 = vmatprep.subr.mxu1 %v936_v27 }
  0xd6   : > { %1466 = vmatprep.subr.mxu0 %v798_v13  ;;  %1498 = vmatpush3.msra.mxu1 %v936_v27 }
  0xd7   : > { %1467 = vmatpush3.msra.mxu0 %v798_v13  ;;  %1499 = vmatprep.subr.mxu1 %v935_v28 }
  0xd8   : > { %1469 = vmatmul.mubr.f32.vlgmr.msra.gmra.mxu0 %v2302_v29  ;;  %1500 = vmatpush3.msra.mxu1 %v935_v28  ;;  %v934_v29 = vld [vmem:[#allocation10] sm:$0xff] }
  0xd9   : > { %1501 = vmatprep.subr.mxu1 %v934_v29 }
  0xda   : > { %1502 = vmatpush3.msra.mxu1 %v934_v29 }
 0x175   : > { %v1341_v30 = vpop.f32.mrf.mxu0 }
 0x177   : > { %v1342_v31 = vpop.f32.mrf.mxu0 }
 0x178   : > { %v1343_v33 = vadd.f32 %v1342_v31, %v1341_v30  ;;  %v1435_v34 = vpop.f32.mrf.mxu1 }
 0x17a   : > { %v1344_v35 = vpop.f32.mrf.mxu0  ;;  %v715_v36 = vadd.f32 %v1343_v33, %v1294_v32  ;;  %v789_v37 = vpop.f32.mrf.mxu1 }
 0x17c   : > { %v1345_v38 = vpop.f32.mrf.mxu0  ;;  %v790_v41 = vadd.f32 %v789_v37, %v715_v36 }
 0x17d   : > { %v1346_v40 = vadd.f32 %v1345_v38, %v1344_v35 }
 0x17e   : > { %v903_v44 = vmul.f32 %v1296_v39, %v790_v41 }
 0x17f   : > { %v720_v43 = vadd.f32 %v1346_v40, %v1294_v32 }
 0x180   : > { %v912_v46 = vadd.f32 %v1297_v42, %v903_v44 }
 0x181   : > { %v795_v45 = vadd.f32 %v1435_v34, %v720_v43 }
 0x182   : > { %v1298_v48 = vmul.f32 -1.442695, %v912_v46 }
 0x183   : > { %v904_v47 = vmul.f32 %v1296_v39, %v795_v45 }
 0x184   : > { %1657 = vpow2.f32 %v1298_v48 }
 0x185   : > { %v913_v49 = vadd.f32 %v1297_v42, %v904_v47 }
 0x187   : > { %v1299_v50 = vmul.f32 -1.442695, %v913_v49 }
 0x189   : > { %1659 = vpow2.f32 %v1299_v50 }
 0x18a   : > { %1661 = vtanh.f32 %v912_v46 }
 0x191   : > { %v1658_v51 = vpop.eup %1657 }
 0x192   : > { %v922_v52 = vadd.f32 1.0, %v1658_v51 }
 0x194   : > { %1663 = vrcp.f32 %v922_v52 }
 0x195   : > { %1665 = vtanh.f32 %v913_v49 }
 0x196   : > { %v1660_v53 = vpop.eup %1659 }
 0x197   : > { %v923_v54 = vadd.f32 1.0, %v1660_v53  ;;  %v1662_v58 = vpop.eup %1661 }
 0x198   : > { %v1470_v55 = vpop.f32.mrf.mxu0 }
 0x199   : > { %1667 = vrcp.f32 %v923_v54  ;;  %v893_v1 = vadd.f32 %v1470_v55, %v1295_v56 }
 0x19a   : > { %v887_v57 = vpop.f32.mrf.mxu0 }
 0x19b   : > { %v888_v59 = vadd.f32 %v1295_v56, %v887_v57 }
 0x1a1   : > { %v1664_v60 = vpop.eup %1663 }
 0x1a2   : > { %v928_v61 = vmul.f32 %v1664_v60, %v1662_v58  ;;  %v1666_v62 = vpop.eup %1665 }
 0x1a4   : > { %v930_v63 = vadd.f32 %v928_v61, %v888_v59 }
 0x1a6   : > { %v1668_v0 = vpop.eup %1667  ;;  %932 = vst [vmem:[%s546_s23] sm:$0xff] %v930_v63  ;;  %1503 = vmatprep.mubr.f32.mxu1 %v930_v63 }
 0x1a7   : > { %v929_v2 = vmul.f32 %v1668_v0, %v1666_v62 }
 0x1a9   : > { %v931_v3 = vadd.f32 %v929_v2, %v893_v1 }
 0x1ab   : > { %933 = vst [vmem:[%s546_s23 + $0x8] sm:$0xff] %v931_v3  ;;  %1504 = vmatmul.mubr.f32.vlgmr.msra.gmra.mxu1 %v931_v3 }
 0x1ac   : > { %1816 = shalt.err (!%p1813_p9)
}
 0x1ad   : > { %s1817_s24 = scalar_lea.hbm %s2343_s16, 256  ;;  %s1821_s12 = scalar_lea.hbm %s2532_s7, 1536 }
 0x1ae   : > { %p1818_p8 = scmp.ne.s32.totalorder %s2343_s16, %s1817_s24  ;;  %p1822_p5 = scmp.lt.s32.totalorder %s2343_s16, %s2532_s7 }
 0x1af   : > { %p1823_p6 = scmp.lt.s32.totalorder %s1821_s12, %s1817_s24 }
 0x1b0   : > { %p1819_p4 = pnand %p1818_p8, %p2533_p12 }
 0x1b1   : > { %p1824_p0 = por %p1823_p6, %p1822_p5 }
 0x1b2   : > { %p1820_p10 = pneg %p1819_p4 }
 0x1b4   : > { %p1825_p2 = pnand %p1824_p0, %p1820_p10 }
 0x1b6   : > { %1828 = shalt.err (!%p1825_p2)
}
 0x1b7   : > { %s1975_s23 = smov 128   ;;  %s1976_s28 = smov 8  }
 0x1b8   : > { %1526 = dma.vmem_to_hbm [thread:$0]  (%p2533_p12), %s2335_s3, 256, %s2343_s16, %s1035_s9, %s1975_s23, %s1975_s23, %s1976_s28  }
 0x1b9   : > { %s2534_s17 = sld [smem:[#allocation39_spill]]  ;;  %s553_s0 = scalar_lea.vmem [#allocation12], %s2265_s25 }
 0x1ba   : > { %s1073_s30 = sshll.u32 %s553_s0, 4  ;;  %s2535_s3 = sld [smem:[#allocation41_spill]]  ;;  %s2375_s30 = int_to_ptr.vmem [resolvable:$true] %s1073_s30 }
 0x1bb   : > { %s1040_s9 = scalar_lea.sflag [#allocation13], %s2262_s22  ;;  %s1829_s25 = scalar_lea.vmem %s2375_s30, 256 }
 0x1bc   : > { %p1830_p1 = scmp.ne.s32.totalorder %s2375_s30, %s1829_s25  ;;  %s1977_s24 = smov [#allocation12]  }
 0x1bd   : > { %s1833_s11 = sshll.u32 %s1977_s24, 4  ;;  %s1834_s11 = int_to_ptr.vmem [resolvable:$false] %s1833_s11 }
 0x1be   : > { %p1831_p11 = pnand %p1830_p1, %p2533_p12  ;;  %s1835_s10 = scalar_lea.vmem %s1834_s11, 512 }
 0x1bf   : > { %v1300_v4 = vld [vmem:[%s2534_s17] ss:$0 sm:$0xff]  ;;  %p1836_p3 = scmp.lt.s32.totalorder %s2375_s30, %s1834_s11  ;;  %p1837_p13 = scmp.lt.s32.totalorder %s1835_s10, %s1829_s25 }
 0x1c0   : > { %s2382_s16 = scalar_lea.hbm %s2535_s3, %s1304_s20  ;;  %p1832_p7 = pneg %p1831_p11 }
 0x1c1   : > { %p1838_p9 = por %p1837_p13, %p1836_p3 }
 0x1c3   : > { %p1839_p8 = pnand %p1838_p9, %p1832_p7 }
 0x26b   : > { %v1505_v5 = vpop.f32.mrf.mxu1 }
 0x26c   : > { %v1029_v6 = vadd.f32 %v1505_v5, %v1300_v4 }
 0x26d   : > { %v1023_v7 = vpop.f32.mrf.mxu1 }
 0x26e   : > { %1033 = vst [vmem:[%s553_s0 + $0x8] sm:$0xff] %v1029_v6  ;;  %v1024_v8 = vadd.f32 %v1300_v4, %v1023_v7 }
 0x270   : > { %1032 = vst [vmem:[%s553_s0] sm:$0xff] %v1024_v8 }
 0x271   : > { %1842 = shalt.err (!%p1839_p8)
}
 0x272   : > { %s1843_s15 = scalar_lea.hbm %s2382_s16, 256  ;;  %s1847_s12 = scalar_lea.hbm %s2535_s3, 1536 }
 0x273   : > { %p1844_p4 = scmp.ne.s32.totalorder %s2382_s16, %s1843_s15  ;;  %p1848_p6 = scmp.lt.s32.totalorder %s2382_s16, %s2535_s3 }
 0x274   : > { %p1849_p0 = scmp.lt.s32.totalorder %s1847_s12, %s1843_s15 }
 0x275   : > { %p1845_p10 = pnand %p1844_p4, %p2533_p12 }
 0x276   : > { %p1850_p2 = por %p1849_p0, %p1848_p6 }
 0x277   : > { %p1846_p5 = pneg %p1845_p10 }
 0x279   : > { %p1851_p1 = pnand %p1850_p2, %p1846_p5 }
 0x27b   : > { %1854 = shalt.err (!%p1851_p1)
}
 0x27c   : > { %1527 = dma.vmem_to_hbm [thread:$0]  (%p2533_p12), %s2375_s30, 256, %s2382_s16, %s1040_s9, %s1975_s23, %s1975_s23, %s1976_s28  }
 0x27d PF: > { %s2536_s6 = sld [smem:[#allocation20_spill]]  ;;  %p1561_p11 = scmp.ge.s32.totalorder %s1965_s27, 2 }
 0x27e   : > { %s2537_s29 = sld [smem:[#allocation26_spill]] }
 0x283   : > { %s1088_s17 = sand.u32 1, %s2536_s6  }
 0x284   : > { %p2538_p7 = scmp.ne.s32.totalorder %s2537_s29, 0  ;;  %s1089_s0 = scalar_lea.sflag [#allocation4], %s1088_s17 }
 0x286   : > { %p1548_p3 = pnand %p1561_p11, %p2538_p7 }
 0x288   : > { %p1549_p13 = pneg %p1548_p3 }
 0x28a   : > { %1916 = dma.done.wait (%p1549_p13), %s1089_s0, 256  }
 0x28b   : > { %1918 = vsyncadd (%p1549_p13), %s1089_s0, 4294967040  ;;  %s1098_s8 = scalar_lea.sflag [#allocation13], %s1088_s17 }
 0x28c   : > { %1920 = dma.done.wait (%p1549_p13), %s1098_s8, 256  }
 0x28d   : > { %1922 = vsyncadd (%p1549_p13), %s1098_s8, 4294967040  ;;  %s35_s27 = sadd.s32 1, %s1965_s27   ;;  %s2539_s5 = sld [smem:[#allocation21_spill]] }
 0x28e   : > { %p32_p9 = scmp.ge.s32.totalorder %s35_s27, 8   ;;  %s2540_s22 = sld [smem:[#allocation30_spill]] }
 0x28f   : > { %s2541_s23 = sld [smem:[#allocation24_spill]]  ;;  %s2544_s17 = smov %s1929_s18 }
 0x290   : > { %s2542_s25 = sld [smem:[#allocation27_spill]]  ;;  %s2545_s18 = smov %s1933_s19 }
 0x291   : > { %s2543_s28 = sld [smem:[#allocation29_spill]]  ;;  %s2546_s19 = smov %s2237_s2 }
 0x292   : > { %s2547_s20 = smov %s1941_s21  ;;  %s2549_s24 = smov %s1961_s26 }
 0x293   : > { %s2548_s21 = smov %s2539_s5  ;;  %34 = sbr.rel (!%p32_p9) target bundleno = 26 (0x1a), region = 153 }
 0x297   : > { %s2550_s26 = smov %s2543_s28 }
 0x298   :  { %1103 = vsyncpa [#allocation3], 1 }
 0x299   :  { %1105 = vsyncpa [#allocation3 + $0x1], 1 }
 0x29a   :  { %1106 = vsyncpa [#allocation6], 1 }
 0x29b   :  { %1108 = vsyncpa [#allocation6 + $0x1], 1 }
 0x29c   :  { %1109 = vsyncpa [#allocation9], 1 }
 0x29d   :  { %1110 = vsyncpa [#allocation4], 1 }
 0x29e   :  { %1112 = vsyncpa [#allocation4 + $0x1], 1 }
 0x29f   :  { %1113 = vsyncpa [#allocation13], 1 }
 0x2a0   :  { %1115 = vsyncpa [#allocation13 + $0x1], 1 }

</bundles_post_ra>
